<compile_context>
chip_gen: v7x
topology: tpu7x:2x2x1
jax: 0.10.0
libtpu: 0.0.40
codegen_flags: <defaults>
</compile_context>

<pallas_src>
import functools

import jax
import jax.numpy as jnp
from jax.experimental import pallas as pl
from jax.experimental.pallas import tpu as pltpu


# ---------------------------------------------------------------------------
# Kernels
# ---------------------------------------------------------------------------

def linear_kernel(h_ref, w_ref, out_ref):
    """XW tile:  out[i] = H[i] @ W   (bf16 in, f32 MXU accumulate, bf16 out)."""
    out_ref[...] = jnp.dot(
        h_ref[...], w_ref[...], preferred_element_type=jnp.float32
    ).astype(out_ref.dtype)


def aggregate_fused_kernel(adj_ref, xw_ref, b_ref, wnext_ref, out_ref, acc_ref):
    """acc[i] = sum_k A_hat[i,k] @ XW[k]; finalize: out = relu(acc + b) @ W_next."""
    k = pl.program_id(1)

    @pl.when(k == 0)
    def _():
        acc_ref[...] = jnp.zeros_like(acc_ref)

    acc_ref[...] += jnp.dot(
        adj_ref[...], xw_ref[...], preferred_element_type=jnp.float32
    )

    @pl.when(k == pl.num_programs(1) - 1)
    def _():
        h = jnp.maximum(acc_ref[...] + b_ref[...], 0.0).astype(jnp.bfloat16)
        out_ref[...] = jnp.dot(
            h, wnext_ref[...], preferred_element_type=jnp.float32
        ).astype(out_ref.dtype)


def aggregate_logsoftmax_kernel(adj_ref, xw_ref, b_ref, out_ref, acc_ref, *,
                                num_classes):
    """acc[i] = sum_k A_hat[i,k] @ XW[k]; finalize: out = log_softmax(acc + b)."""
    k = pl.program_id(1)

    @pl.when(k == 0)
    def _():
        acc_ref[...] = jnp.zeros_like(acc_ref)

    acc_ref[...] += jnp.dot(
        adj_ref[...], xw_ref[...], preferred_element_type=jnp.float32
    )

    @pl.when(k == pl.num_programs(1) - 1)
    def _():
        h = acc_ref[...] + b_ref[...]                      # f32 bias add
        col = jax.lax.broadcasted_iota(jnp.int32, h.shape, 1)
        h = jnp.where(col < num_classes, h, -1e30)         # mask padded classes
        m = jnp.max(h, axis=1, keepdims=True)
        s = h - m
        lse = jnp.log(jnp.sum(jnp.exp(s), axis=1, keepdims=True))
        out_ref[...] = (s - lse).astype(out_ref.dtype)


# ---------------------------------------------------------------------------
# pallas_call wrappers
# ---------------------------------------------------------------------------

# 48 MiB: comfortably covers the <=20 MiB worst-case tiling here, leaves headroom on
# v7x (64 MiB physical VMEM) and is well under v5e/v6e's 128 MiB.
_VMEM_LIMIT = 48 * 1024 * 1024


def _linear(h, w, *, tm):
    n_pad, fin = h.shape
    fout = w.shape[1]
    return pl.pallas_call(
        linear_kernel,
        out_shape=jax.ShapeDtypeStruct((n_pad, fout), jnp.bfloat16),
        grid_spec=pltpu.PrefetchScalarGridSpec(
            num_scalar_prefetch=0,
            grid=(n_pad // tm,),
            in_specs=[pl.BlockSpec((tm, fin), lambda i: (i, 0)),
                      pl.BlockSpec((fin, fout), lambda i: (0, 0))],
            out_specs=pl.BlockSpec((tm, fout), lambda i: (i, 0)),
        ),
        compiler_params=pltpu.CompilerParams(
            dimension_semantics=("parallel",),
            vmem_limit_bytes=_VMEM_LIMIT),
    )(h, w)


def _aggregate_fused(adj, xw, b, w_next, *, tm, tk):
    """relu(A_hat @ XW + b) @ W_next, fused in one kernel. Returns next layer's XW (bf16)."""
    n_pad = adj.shape[0]
    fin = xw.shape[1]
    fout = w_next.shape[1]
    return pl.pallas_call(
        aggregate_fused_kernel,
        out_shape=jax.ShapeDtypeStruct((n_pad, fout), jnp.bfloat16),
        grid_spec=pltpu.PrefetchScalarGridSpec(
            num_scalar_prefetch=0,
            grid=(n_pad // tm, n_pad // tk),              # (row tiles, reduction tiles)
            in_specs=[pl.BlockSpec((tm, tk), lambda i, k: (i, k)),      # A_hat tile
                      pl.BlockSpec((tk, fin), lambda i, k: (k, 0)),     # XW tile
                      pl.BlockSpec((1, fin), lambda i, k: (0, 0)),      # bias (resident)
                      pl.BlockSpec((fin, fout), lambda i, k: (0, 0))],  # W_next (resident)
            out_specs=pl.BlockSpec((tm, fout), lambda i, k: (i, 0)),
            scratch_shapes=[pltpu.VMEM((tm, fin), jnp.float32)],
        ),
        compiler_params=pltpu.CompilerParams(
            dimension_semantics=("parallel", "arbitrary"),
            vmem_limit_bytes=_VMEM_LIMIT),
    )(adj, xw, b, w_next)


def _aggregate_logsoftmax(adj, xw, b, *, num_classes, tm, tk):
    """log_softmax(A_hat @ XW + b) over the first num_classes columns (f32 out)."""
    n_pad = adj.shape[0]
    fout = xw.shape[1]
    kernel = functools.partial(aggregate_logsoftmax_kernel, num_classes=num_classes)
    return pl.pallas_call(
        kernel,
        out_shape=jax.ShapeDtypeStruct((n_pad, fout), jnp.float32),
        grid_spec=pltpu.PrefetchScalarGridSpec(
            num_scalar_prefetch=0,
            grid=(n_pad // tm, n_pad // tk),
            in_specs=[pl.BlockSpec((tm, tk), lambda i, k: (i, k)),
                      pl.BlockSpec((tk, fout), lambda i, k: (k, 0)),
                      pl.BlockSpec((1, fout), lambda i, k: (0, 0))],
            out_specs=pl.BlockSpec((tm, fout), lambda i, k: (i, 0)),
            scratch_shapes=[pltpu.VMEM((tm, fout), jnp.float32)],
        ),
        compiler_params=pltpu.CompilerParams(
            dimension_semantics=("parallel", "arbitrary"),
            vmem_limit_bytes=_VMEM_LIMIT),
    )(adj, xw, b)


# ---------------------------------------------------------------------------
# Graph / parameter glue (plain JAX)
# ---------------------------------------------------------------------------

def normalized_adjacency_padded(edge_index, num_nodes, n_pad, dtype):
    """Dense GCN adjacency D^{-1/2} (A + I) D^{-1/2}, built directly at padded shape.

    Padded rows/cols have zero degree -> zero rows/cols -> inert in the aggregation.
    Self-loops are added with maximum() so pre-existing ones don't double to 2.0.
    """
    src, dst = edge_index[0], edge_index[1]
    A = jnp.zeros((n_pad, n_pad), jnp.float32).at[dst, src].set(1.0)
    diag = jnp.arange(num_nodes)
    A = A.at[diag, diag].max(1.0)
    deg = jnp.sum(A, axis=1)
    d_inv_sqrt = jnp.where(deg > 0, 1.0 / jnp.sqrt(deg), 0.0)
    return (d_inv_sqrt[:, None] * A * d_inv_sqrt[None, :]).astype(dtype)


def init_params(key, input_dim, hidden_dim, output_dim):
    dims = [(input_dim, hidden_dim),
            (hidden_dim, hidden_dim),
            (hidden_dim, hidden_dim),
            (hidden_dim, output_dim)]
    params = {}
    keys = jax.random.split(key, len(dims))
    for i, ((fan_in, fan_out), k) in enumerate(zip(dims, keys), start=1):
        limit = jnp.sqrt(6.0 / (fan_in + fan_out))            # glorot-uniform (PyG default)
        params[f"w{i}"] = jax.random.uniform(
            k, (fan_in, fan_out), jnp.float32, -limit, limit)
        params[f"b{i}"] = jnp.zeros((1, fan_out), jnp.float32)  # PyG inits bias to zero
    return params


def _round_up(x, m):
    return (x + m - 1) // m * m


def _pad2(a, rows, cols, dtype):
    out = jnp.zeros((rows, cols), dtype).at[:a.shape[0], :a.shape[1]].set(a.astype(dtype))
    return out


def _pick_tile(n_pad, cap, min_tiles=1):
    """Largest multiple-of-128 divisor of n_pad that is <= cap and leaves >= min_tiles tiles."""
    best = 128
    t = 128
    while t <= min(cap, n_pad):
        if n_pad % t == 0 and n_pad // t >= min_tiles:
            best = t
        t += 128
    return best


# ---------------------------------------------------------------------------
# Forward pass
# ---------------------------------------------------------------------------

def gnn_forward(x, edge_index, params):
    n, in_dim = x.shape
    hid = params["w1"].shape[1]
    out_dim = params["w4"].shape[1]

    # Lane/sublane-friendly padded sizes.
    n_pad = _round_up(n, 128)
    fin_pad = _round_up(in_dim, 128)
    fh_pad = _round_up(hid, 128)
    fo_pad = _round_up(out_dim, 128)

    # Big row tiles (HBM-bound stage), but keep >= 2 row tiles so v7x's two
    # TensorCores both get work via the "parallel" axis; tk slightly smaller to
    # bound the double-buffered adjacency tile.
    tm = _pick_tile(n_pad, cap=2048, min_tiles=2 if n_pad >= 256 else 1)
    tk = _pick_tile(n_pad, cap=1024, min_tiles=1)

    adj = normalized_adjacency_padded(edge_index, n, n_pad, jnp.bfloat16)
    h = _pad2(x, n_pad, fin_pad, jnp.bfloat16)

    wdims = [(fin_pad, fh_pad), (fh_pad, fh_pad), (fh_pad, fh_pad), (fh_pad, fo_pad)]
    ws = [_pad2(params[f"w{i+1}"], *wdims[i], jnp.bfloat16) for i in range(4)]
    bs = [_pad2(params[f"b{i+1}"], 1, wdims[i][1], jnp.float32) for i in range(4)]

    # TODO(synk): F.dropout(p=0.5/0.25) is identity in inference mode (training=False); omitted.

    # Layer 1 linear (input_dim can be large, e.g. 768): standalone matmul.
    xw = _linear(h, ws[0], tm=tm)

    # Layers 1..3: aggregate + bias + ReLU + next layer's linear, fused per pallas_call.
    for i in range(3):
        xw = _aggregate_fused(adj, xw, bs[i], ws[i + 1], tm=tm, tk=tk)

    # Layer 4: aggregate + bias + log_softmax.
    out = _aggregate_logsoftmax(adj, xw, bs[3], num_classes=out_dim, tm=tm, tk=tk)
    return out[:n, :out_dim]


# ---------------------------------------------------------------------------
# Pure-JAX reference (bf16-matched precision) for correctness checking
# ---------------------------------------------------------------------------

def gnn_reference(x, edge_index, params):
    n = x.shape[0]
    adj = normalized_adjacency_padded(edge_index, n, n, jnp.bfloat16)

    def gcn(h, w, b):
        xw = jnp.dot(h.astype(jnp.bfloat16), w.astype(jnp.bfloat16),
                     preferred_element_type=jnp.float32).astype(jnp.bfloat16)
        return jnp.dot(adj, xw, preferred_element_type=jnp.float32) + b

    h = jax.nn.relu(gcn(x, params["w1"], params["b1"])).astype(jnp.bfloat16)
    h = jax.nn.relu(gcn(h, params["w2"], params["b2"])).astype(jnp.bfloat16)
    h = jax.nn.relu(gcn(h, params["w3"], params["b3"])).astype(jnp.bfloat16)
    h = gcn(h, params["w4"], params["b4"])
    return jax.nn.log_softmax(h, axis=1)


# ---------------------------------------------------------------------------
# Smoke test
# ---------------------------------------------------------------------------

if __name__ == "__main__":
    # Small synthetic graph: 8 nodes, input_dim=32 (stand-in for BERT 768),
    # hidden_dim=16, output_dim=3 (sentiment classes).
    N, INPUT_DIM, HIDDEN_DIM, OUTPUT_DIM = 8, 32, 16, 3

    key = jax.random.PRNGKey(0)
    k_x, k_p = jax.random.split(key)

    x = jax.random.normal(k_x, (N, INPUT_DIM), jnp.float32)

    # ring graph, both directions (what a typical undirected edge_list expands to)
    src = jnp.arange(N, dtype=jnp.int32)
    dst = (src + 1) % N
    edge_index = jnp.stack([jnp.concatenate([src, dst]),
                            jnp.concatenate([dst, src])], axis=0)

    params = init_params(k_p, INPUT_DIM, HIDDEN_DIM, OUTPUT_DIM)

    out = gnn_forward(x, edge_index, params)
    out = jax.block_until_ready(out)

    ref = gnn_reference(x, edge_index, params)
    assert out.shape == (N, OUTPUT_DIM)
    assert jnp.allclose(out, ref, atol=2e-3, rtol=2e-3), "mismatch vs reference"
    # rows of log_softmax should sum (in prob space) to 1
    assert jnp.allclose(jnp.sum(jnp.exp(out), axis=1), 1.0, atol=1e-3)

    print("KERNEL_OK")
</pallas_src>

<mosaic_0001>
module attributes {stable_mosaic.version = 11 : i64} {
  func.func @linear_kernel(%arg0: i32, %arg1: memref<128x128xbf16, #tpu.memory_space<vmem>>, %arg2: memref<128x128xbf16, #tpu.memory_space<vmem>>, %arg3: memref<128x128xbf16, #tpu.memory_space<vmem>>) attributes {dimension_semantics = [#tpu.dimension_semantics<parallel>], iteration_bounds = array<i64: 1>, scalar_prefetch = 0 : i64, scratch_operands = 0 : i64, tpu.core_type = #tpu.core_type<tc>, window_params = [{transform_indices = @transform_0, window_bounds = array<i64: 128, 128>}, {pipeline_mode = #tpu.pipeline_mode<synchronous>, transform_indices = @transform_1, window_bounds = array<i64: 128, 128>}, {transform_indices = @transform_2, window_bounds = array<i64: 128, 128>}]} {
    %c0 = arith.constant 0 : index
    %c0_0 = arith.constant 0 : index
    %0 = vector.load %arg1[%c0, %c0_0] : memref<128x128xbf16, #tpu.memory_space<vmem>>, vector<128x128xbf16>
    %c0_1 = arith.constant 0 : index
    %c0_2 = arith.constant 0 : index
    %1 = vector.load %arg2[%c0_1, %c0_2] : memref<128x128xbf16, #tpu.memory_space<vmem>>, vector<128x128xbf16>
    %cst = arith.constant dense<0.000000e+00> : vector<128x128xf32>
    %2 = tpu.matmul %0, %1, %cst {dimension_numbers = #tpu.dot_dimension_numbers<[1], [0], [0], [1], [0, 0, 1, 1], [], []>} : vector<128x128xbf16>, vector<128x128xbf16>, vector<128x128xf32> -> vector<128x128xf32>
    %3 = arith.truncf %2 : vector<128x128xf32> to vector<128x128xbf16>
    %c0_3 = arith.constant 0 : index
    %c0_4 = arith.constant 0 : index
    %4 = vector.load %arg3[%c0_3, %c0_4] : memref<128x128xbf16, #tpu.memory_space<vmem>>, vector<128x128xbf16>
    tpu.vector_store %arg3[%c0_3, %c0_4], %3 {strides = array<i32>} : memref<128x128xbf16, #tpu.memory_space<vmem>>, vector<128x128xbf16>,
    return
  }
  func.func @transform_0(%arg0: i32) -> (i32, i32) {
    %c0_i32 = arith.constant 0 : i32
    %c0_i32_0 = arith.constant 0 : i32
    return %arg0, %c0_i32 : i32, i32
  }
  func.func @transform_1(%arg0: i32) -> (i32, i32) {
    %c0_i32 = arith.constant 0 : i32
    %c0_i32_0 = arith.constant 0 : i32
    %c0_i32_1 = arith.constant 0 : i32
    return %c0_i32, %c0_i32_0 : i32, i32
  }
  func.func @transform_2(%arg0: i32) -> (i32, i32) {
    %c0_i32 = arith.constant 0 : i32
    %c0_i32_0 = arith.constant 0 : i32
    return %arg0, %c0_i32 : i32, i32
  }
}

</mosaic_0001>

<bundles_post_ra>
// kernel: tpu_custom_call.1
= control target key start
LH: loop header
LB: loop body
LE: loop exit
PB: predicated region body
PF: predicated region fallthrough
CT: control target
= control target key end

     0   :  { %7 = vsyncpa [#allocation3], 0  ;;  %s681_s0 = inlined_call_operand.hbm [shape: bf16[128,128], index: 0, kind: input, shape index: {}]   ;;  %s682_s1 = inlined_call_operand.hbm [shape: bf16[128,128], index: 1, kind: input, shape index: {}]   ;;  %s683_s2 = inlined_call_operand.hbm [shape: bf16[128,128], index: 2, kind: output, shape index: {}]  }
   0x1   :  { %8 = vsyncpa [#allocation6], 0 }
   0x2   :  { %9 = vsyncpa [#allocation4], 0  ;;  %s616_s9 = smov [#allocation2]   ;;  %s544_s13 = scalar_lea.hbm %s681_s0, 1024 }
   0x3   :  { %s15_s10 = sshll.u32 %s616_s9, 4  ;;  %p545_p0 = scmp.ne.s32.totalorder %s681_s0, %s544_s13  ;;  %s16_s10 = int_to_ptr.vmem [resolvable:$true] %s15_s10 }
   0x4   :  { %p548_p1 = scmp.lt.u32.totalorder %s544_s13, %s681_s0 }
   0x6   :  { %p550_p2 = pnand %p548_p1, %p545_p0 }
   0x8   :  { %553 = shalt.err (!%p550_p2)
}
   0x9   :  { %s554_s18 = scalar_lea.vmem %s16_s10, 1024  ;;  %p559_p4 = scmp.lt.s32.totalorder %s16_s10, %s16_s10 }
   0xa   :  { %p555_p3 = scmp.ne.s32.totalorder %s16_s10, %s554_s18  ;;  %p560_p5 = scmp.lt.s32.totalorder %s554_s18, %s554_s18 }
   0xc   :  { %p561_p6 = por %p560_p5, %p559_p4 }
   0xe   :  { %p562_p7 = pnand %p561_p6, %p555_p3 }
  0x10   :  { %565 = shalt.err (!%p562_p7)
}
  0x11   :  { %s617_s19 = smov 64   ;;  %s618_s20 = smov 4  }
  0x12   :  { %21 = dma.hbm_to_vmem [thread:$0]  %s681_s0, 1024, %s16_s10, [#allocation3], %s617_s19, %s617_s19, %s618_s20  }
  0x13   :  { %s619_s23 = smov [#allocation5]   ;;  %s566_s27 = scalar_lea.hbm %s682_s1, 1024 }
  0x14   :  { %s27_s24 = sshll.u32 %s619_s23, 4  ;;  %p567_p8 = scmp.ne.s32.totalorder %s682_s1, %s566_s27  ;;  %s28_s24 = int_to_ptr.vmem [resolvable:$true] %s27_s24 }
  0x15   :  { %p570_p9 = scmp.lt.u32.totalorder %s566_s27, %s682_s1 }
  0x17   :  { %p572_p10 = pnand %p570_p9, %p567_p8 }
  0x19   :  { %575 = shalt.err (!%p572_p10)
}
  0x1a   :  { %s576_s4 = scalar_lea.vmem %s28_s24, 1024  ;;  %p581_p12 = scmp.lt.s32.totalorder %s28_s24, %s28_s24 }
  0x1b   :  { %p577_p11 = scmp.ne.s32.totalorder %s28_s24, %s576_s4  ;;  %p582_p13 = scmp.lt.s32.totalorder %s576_s4, %s576_s4 }
  0x1d   :  { %p583_p0 = por %p582_p13, %p581_p12 }
  0x1f   :  { %p584_p1 = pnand %p583_p0, %p577_p11 }
  0x21   :  { %587 = shalt.err (!%p584_p1)
}
  0x22   :  { %33 = dma.hbm_to_vmem [thread:$0]  %s682_s1, 1024, %s28_s24, [#allocation6], %s617_s19, %s617_s19, %s618_s20  }
  0x23   :  { %610 = dma.done.wait [#allocation3], 1024  }
  0x24   :  { %611 = vsyncadd [#allocation3], 4294966272 }
  0x25   :  { %612 = dma.done.wait [#allocation6], 1024  }
  0x26   :  { %613 = vsyncadd [#allocation6], 4294966272  ;;  %v528_v0 = vld [vmem:[#allocation5] sm:$0xff]   ;;  %v529_v1 = vld [vmem:[#allocation5 + $0x8] sm:$0xff]   ;;  %s620_s1 = smov [#allocation7]  }
  0x27   :  { %475 = vmatprep.subr.bf16.mxu0 %v528_v0  ;;  %507 = vmatprep.subr.bf16.mxu1 %v528_v0  ;;  %v530_v2 = vld [vmem:[#allocation5 + $0x10] sm:$0xff]   ;;  %v531_v3 = vld [vmem:[#allocation5 + $0x18] sm:$0xff]   ;;  %v536_v4 = vld [vmem:[#allocation2] sm:$0xff]   ;;  %s351_s6 = sshll.u32 %s620_s1, 4  ;;  %s352_s6 = int_to_ptr.vmem [resolvable:$true] %s351_s6 }
  0x28   :  { %476 = vmatpush3.bf16.msra.mxu0 %v528_v0  ;;  %515 = vmatpush3.bf16.msra.mxu1 %v528_v0  ;;  %v537_v5 = vld [vmem:[#allocation2 + $0x20] sm:$0xff]   ;;  %v533_v7 = vld [vmem:[#allocation5 + $0x28] sm:$0xff]   ;;  %v534_v8 = vld [vmem:[#allocation5 + $0x30] sm:$0xff]   ;;  %s588_s7 = scalar_lea.vmem %s352_s6, 1024  ;;  %p593_p3 = scmp.lt.s32.totalorder %s352_s6, %s352_s6 }
  0x29   :  { %477 = vmatprep.subr.bf16.mxu0 %v529_v1  ;;  %508 = vmatprep.subr.bf16.mxu1 %v529_v1  ;;  %v532_v6 = vld [vmem:[#allocation5 + $0x20] sm:$0xff]   ;;  %v535_v9 = vld [vmem:[#allocation5 + $0x38] sm:$0xff]   ;;  %v538_v10 = vld [vmem:[#allocation2 + $0x8] sm:$0xff]   ;;  %p589_p2 = scmp.ne.s32.totalorder %s352_s6, %s588_s7  ;;  %p594_p4 = scmp.lt.s32.totalorder %s588_s7, %s588_s7 }
  0x2a   :  { %491 = vmatprep.mubr.bf16.mxu0 %v536_v4  ;;  %499 = vmatprep.mubr.bf16.mxu1 %v537_v5  ;;  %v539_v11 = vld [vmem:[#allocation2 + $0x28] sm:$0xff]   ;;  %v540_v12 = vld [vmem:[#allocation2 + $0x10] sm:$0xff]   ;;  %v542_v14 = vld [vmem:[#allocation2 + $0x18] sm:$0xff]  }
  0x2b   :  { %v541_v13 = vld [vmem:[#allocation2 + $0x30] sm:$0xff]   ;;  %v543_v15 = vld [vmem:[#allocation2 + $0x38] sm:$0xff]   ;;  %p595_p5 = por %p594_p4, %p593_p3 }
  0x2c   :  { %478 = vmatpush3.bf16.msra.mxu0 %v529_v1  ;;  %516 = vmatpush3.bf16.msra.mxu1 %v529_v1 }
  0x2d   :  { %479 = vmatprep.subr.bf16.mxu0 %v530_v2  ;;  %509 = vmatprep.subr.bf16.mxu1 %v530_v2  ;;  %p596_p6 = pnand %p595_p5, %p589_p2 }
  0x30   :  { %480 = vmatpush3.bf16.msra.mxu0 %v530_v2  ;;  %517 = vmatpush3.bf16.msra.mxu1 %v530_v2 }
  0x31   :  { %481 = vmatprep.subr.bf16.mxu0 %v531_v3  ;;  %510 = vmatprep.subr.bf16.mxu1 %v531_v3 }
  0x34   :  { %482 = vmatpush3.bf16.msra.mxu0 %v531_v3  ;;  %518 = vmatpush3.bf16.msra.mxu1 %v531_v3 }
  0x35   :  { %483 = vmatprep.subr.bf16.mxu0 %v532_v6  ;;  %511 = vmatprep.subr.bf16.mxu1 %v532_v6 }
  0x38   :  { %484 = vmatpush3.bf16.msra.mxu0 %v532_v6  ;;  %519 = vmatpush3.bf16.msra.mxu1 %v532_v6 }
  0x39   :  { %485 = vmatprep.subr.bf16.mxu0 %v533_v7  ;;  %512 = vmatprep.subr.bf16.mxu1 %v533_v7 }
  0x3c   :  { %486 = vmatpush3.bf16.msra.mxu0 %v533_v7  ;;  %520 = vmatpush3.bf16.msra.mxu1 %v533_v7 }
  0x3d   :  { %487 = vmatprep.subr.bf16.mxu0 %v534_v8  ;;  %513 = vmatprep.subr.bf16.mxu1 %v534_v8 }
  0x40   :  { %488 = vmatpush3.bf16.msra.mxu0 %v534_v8  ;;  %521 = vmatpush3.bf16.msra.mxu1 %v534_v8 }
  0x41   :  { %489 = vmatprep.subr.bf16.mxu0 %v535_v9  ;;  %514 = vmatprep.subr.bf16.mxu1 %v535_v9 }
  0x44   :  { %490 = vmatpush3.bf16.msra.mxu0 %v535_v9  ;;  %522 = vmatpush3.bf16.msra.mxu1 %v535_v9 }
  0x47   :  { %492 = vmatmul.mubr.bf16.vlgmr.msra.gmra.mrb[0].mxu0 %v538_v10  ;;  %500 = vmatmul.mubr.bf16.vlgmr.msra.gmra.mrb[0].mxu1 %v539_v11 }
  0x48   :  { %495 = vmatprep.mubr.bf16.mxu0 %v540_v12  ;;  %503 = vmatprep.mubr.bf16.mxu1 %v541_v13 }
  0x4f   :  { %496 = vmatmul.mubr.bf16.gmra.mrb[4].mxu0 %v542_v14  ;;  %504 = vmatmul.mubr.bf16.gmra.mrb[4].mxu1 %v543_v15 }
 0x11a   :  { %v493_v16 = vpop.f32.mrb[0].mxu0  ;;  %v501_v17 = vpop.f32.mrb[0].mxu1 }
 0x11b   :  { %v203_v18 = vpop.f32.mrb[1].mxu0  ;;  %v235_v19 = vpop.f32.mrb[1].mxu1 }
 0x11c   :  { %v494_v20 = vpop.f32.mrb[2].mxu0  ;;  %v502_v21 = vpop.f32.mrb[2].mxu1 }
 0x11d   :  { %v420_v22 = vpack.c.bf16 %v494_v20, %v493_v16  ;;  %v440_v23 = vpack.c.bf16 %v502_v21, %v501_v17  ;;  %v206_v24 = vpop.f32.mrb[3].mxu0  ;;  %v238_v25 = vpop.f32.mrb[3].mxu1 }
 0x11e   :  { %v415_v26 = vpack.c.bf16 %v206_v24, %v203_v18  ;;  %v435_v27 = vpack.c.bf16 %v238_v25, %v235_v19 }
 0x11f   :  { %452 = vst [vmem:[#allocation7 + $0x8] sm:$0xff] %v420_v22   ;;  %456 = vst [vmem:[#allocation7 + $0x28] sm:$0xff] %v440_v23  }
 0x120   :  { %416 = vst [vmem:[#allocation7] sm:$0xff] %v415_v26   ;;  %455 = vst [vmem:[#allocation7 + $0x20] sm:$0xff] %v435_v27  }
 0x122   :  { %v497_v28 = vpop.f32.mrb[4].mxu0  ;;  %v505_v29 = vpop.f32.mrb[4].mxu1 }
 0x123   :  { %v219_v30 = vpop.f32.mrb[5].mxu0  ;;  %v251_v31 = vpop.f32.mrb[5].mxu1 }
 0x124   :  { %v498_v32 = vpop.f32.mrb[6].mxu0  ;;  %v506_v33 = vpop.f32.mrb[6].mxu1 }
 0x125   :  { %v430_v34 = vpack.c.bf16 %v498_v32, %v497_v28  ;;  %v450_v35 = vpack.c.bf16 %v506_v33, %v505_v29  ;;  %v222_v36 = vpop.f32.mrb[7].mxu0  ;;  %v254_v37 = vpop.f32.mrb[7].mxu1 }
 0x126   :  { %v425_v38 = vpack.c.bf16 %v222_v36, %v219_v30  ;;  %v445_v39 = vpack.c.bf16 %v254_v37, %v251_v31 }
 0x127   :  { %454 = vst [vmem:[#allocation7 + $0x18] sm:$0xff] %v430_v34   ;;  %458 = vst [vmem:[#allocation7 + $0x38] sm:$0xff] %v450_v35  }
 0x128   :  { %453 = vst [vmem:[#allocation7 + $0x10] sm:$0xff] %v425_v38   ;;  %457 = vst [vmem:[#allocation7 + $0x30] sm:$0xff] %v445_v39  }
 0x129   :  { %599 = shalt.err (!%p596_p6)
}
 0x12a   :  { %s600_s10 = scalar_lea.hbm %s683_s2, 1024 }
 0x12b   :  { %p601_p7 = scmp.ne.s32.totalorder %s683_s2, %s600_s10  ;;  %p604_p8 = scmp.lt.u32.totalorder %s600_s10, %s683_s2 }
 0x12d   :  { %p606_p9 = pnand %p604_p8, %p601_p7 }
 0x12f   :  { %609 = shalt.err (!%p606_p9)
}
 0x130   :  { %357 = dma.vmem_to_hbm [thread:$0]  %s352_s6, 1024, %s683_s2, [#allocation4], %s617_s19, %s617_s19, %s618_s20  }
 0x131   :  { %614 = dma.done.wait [#allocation4], 1024  }
 0x132   :  { %615 = vsyncadd [#allocation4], 4294966272 }
 0x133   :  { %361 = vsyncpa [#allocation3], 1 }
 0x134   :  { %362 = vsyncpa [#allocation6], 1 }
 0x135   :  { %363 = vsyncpa [#allocation4], 1 }

</bundles_post_ra>
